<compile_context>
chip_gen: v5e
topology: v5e:2x2
jax: 0.10.0
libtpu: 0.0.40
codegen_flags: <defaults>
</compile_context>

<pallas_src>
import math

import jax
import jax.numpy as jnp
from jax.experimental import pallas as pl
from jax.experimental.pallas import tpu as pltpu


def _copy_kernel(x_ref, o_ref):
    # Identity copy of the current (block_rows, lane) tile.
    o_ref[...] = x_ref[...]


def _choose_tiling(total, itemsize, max_tile_bytes=2 * 1024 * 1024):
    """Pick a lane-dense 2-D tiling (rows, lane) + block_rows for `total` elems.

    Returns (rows, lane, block_rows) or None if the Pallas copy should be
    skipped (not 128-divisible, or a legal block would be too large for the
    v7x 32 MiB scoped-VMEM budget with double buffering).
    """
    if total <= 0 or total % 128 != 0:
        return None

    # Prefer wider lanes, but keep the sublane count 8-aligned when possible.
    lane = None
    for cand in (512, 256, 128):
        if total % cand == 0 and (total // cand) % 8 == 0:
            lane = cand
            break
    if lane is None:
        for cand in (512, 256, 128):
            if total % cand == 0:
                lane = cand
                break
    rows = total // lane

    if rows % 8 == 0:
        # Grow the sublane block: multiple of 8, divides rows, caps at
        # ~2 MiB/tile (4 double-buffered tiles stay well under 16 MiB scoped
        # VMEM on every generation, including v7x), and keeps >= ~8 grid
        # steps once tiles are reasonably sized (so both v7x cores get work).
        max_rows = max(8, max_tile_bytes // (lane * itemsize))
        limit = min(rows, max_rows)
        block_rows = 8
        while (block_rows * 2 <= limit
               and rows % (block_rows * 2) == 0
               and (rows // (block_rows * 2) >= 8
                    or block_rows * lane * itemsize < 256 * 1024)):
            block_rows *= 2
    else:
        # Only a full-extent block is legal; use it only if it is small.
        if rows * lane * itemsize > max_tile_bytes:
            return None
        block_rows = rows

    return rows, lane, block_rows


def reshape_pallas(x, target_shape):
    """Equivalent of Reshape(args).forward(x): x.view((b, *target_shape))."""
    b = x.shape[0]
    n = math.prod(x.shape[1:])
    assert n == math.prod(target_shape), (
        f"cannot reshape {x.shape} to (b, {target_shape})"
    )

    total = b * n
    itemsize = jnp.dtype(x.dtype).itemsize
    tiling = _choose_tiling(total, itemsize)

    if tiling is None:
        # Reshape is metadata-only in XLA: this is the fastest correct path.
        return jnp.reshape(x, (b, *target_shape))

    rows, lane, block_rows = tiling

    # Glue: row-major flatten (same element order as torch .view), presented
    # as a lane-dense (rows, lane) slab so stores are unmasked full-vreg vst.
    flat = jnp.reshape(x, (rows, lane))

    out_flat = pl.pallas_call(
        _copy_kernel,
        out_shape=jax.ShapeDtypeStruct((rows, lane), flat.dtype),
        grid=(rows // block_rows,),
        in_specs=[pl.BlockSpec((block_rows, lane), lambda i: (i, 0))],
        out_specs=pl.BlockSpec((block_rows, lane), lambda i: (i, 0)),
        # Identity copy: alias the output onto the input buffer so XLA can
        # donate/in-place it instead of allocating + writing a second slab.
        input_output_aliases={0: 0},
        compiler_params=pltpu.CompilerParams(
            dimension_semantics=("parallel",)
        ),
        cost_estimate=pl.CostEstimate(
            flops=0,
            transcendentals=0,
            bytes_accessed=2 * total * itemsize,
        ),
    )(flat)

    # Glue: present the requested output shape (metadata only).
    return jnp.reshape(out_flat, (b, *target_shape))


class ReshapeModule:
    """Mirror of the PyTorch module's interface (no parameters)."""

    def __init__(self, args):
        self.shape = tuple(args)

    def __call__(self, x):
        return reshape_pallas(x, self.shape)


if __name__ == "__main__":
    key = jax.random.PRNGKey(0)

    # Small NCHW-style input: (batch=2, channels=4, H=16, W=16).
    x = jax.random.normal(key, (2, 4, 16, 16), dtype=jnp.float32)

    # Target shape (per-sample): (16, 64); 16*64 == 4*16*16.
    mod = ReshapeModule((16, 64))

    y = mod(x)
    y = jax.block_until_ready(y)

    # Sanity check against the pure-JAX reference (same semantics as torch .view).
    ref = jnp.reshape(x, (x.shape[0], 16, 64))
    assert y.shape == (2, 16, 64), y.shape
    assert y.dtype == x.dtype
    assert bool(jnp.all(y == ref))

    # Also exercise the indivisible-total fallback path (pure metadata reshape).
    x2 = jax.random.normal(key, (2, 3, 5, 7), dtype=jnp.float32)
    y2 = jax.block_until_ready(ReshapeModule((15, 7))(x2))
    assert y2.shape == (2, 15, 7)
    assert bool(jnp.all(y2 == jnp.reshape(x2, (2, 15, 7))))

    print("KERNEL_OK")
</pallas_src>

<mosaic_0001>
module attributes {stable_mosaic.version = 11 : i64} {
  func.func @_copy_kernel(%arg0: i32, %arg1: memref<8x256xf32, #tpu.memory_space<vmem>>, %arg2: memref<8x256xf32, #tpu.memory_space<vmem>>) attributes {dimension_semantics = [#tpu.dimension_semantics<parallel>], iteration_bounds = array<i64: 1>, scalar_prefetch = 0 : i64, scratch_operands = 0 : i64, tpu.core_type = #tpu.core_type<tc>, window_params = [{transform_indices = @transform_0, window_bounds = array<i64: 8, 256>}, {transform_indices = @transform_1, window_bounds = array<i64: 8, 256>}]} {
    %c0 = arith.constant 0 : index
    %c0_0 = arith.constant 0 : index
    %0 = vector.load %arg1[%c0, %c0_0] : memref<8x256xf32, #tpu.memory_space<vmem>>, vector<8x256xf32>
    %c0_1 = arith.constant 0 : index
    %c0_2 = arith.constant 0 : index
    %1 = vector.load %arg2[%c0_1, %c0_2] : memref<8x256xf32, #tpu.memory_space<vmem>>, vector<8x256xf32>
    tpu.vector_store %arg2[%c0_1, %c0_2], %0 {strides = array<i32>} : memref<8x256xf32, #tpu.memory_space<vmem>>, vector<8x256xf32>,
    return
  }
  func.func @transform_0(%arg0: i32) -> (i32, i32) {
    %c0_i32 = arith.constant 0 : i32
    %c0_i32_0 = arith.constant 0 : i32
    return %arg0, %c0_i32 : i32, i32
  }
  func.func @transform_1(%arg0: i32) -> (i32, i32) {
    %c0_i32 = arith.constant 0 : i32
    %c0_i32_0 = arith.constant 0 : i32
    return %arg0, %c0_i32 : i32, i32
  }
}

</mosaic_0001>

<bundles_post_ra>
// kernel: tpu_custom_call.1
= control target key start
LH: loop header
LB: loop body
LE: loop exit
PB: predicated region body
PF: predicated region fallthrough
CT: control target
= control target key end

     0   :  { %6 = vsyncpa [#allocation3], 0  ;;  %s116_s0 = inlined_call_operand.hbm [shape: f32[8,256], index: 0, kind: input, shape index: {}, may-alias: {0,1}]   ;;  %s117_s1 = inlined_call_operand.hbm [shape: f32[8,256], index: 1, kind: output, shape index: {}, may-alias: {0,1}]  }
   0x1   :  { %7 = vsyncpa [#allocation4], 0  ;;  %s13_s8 = sshll.u32 %s116_s0, 4  ;;  %s98_s9 = smov [#allocation2]   ;;  %s14_s8 = int_to_ptr.hbm [resolvable:$true] %s13_s8 }
   0x2   :  { %s15_s10 = sshll.u32 %s98_s9, 4  ;;  %s16_s10 = int_to_ptr.vmem [resolvable:$true] %s15_s10 }
   0x3   :  { %18 = dma.hbm_to_vmem [thread:$0]  %s14_s8, 256, %s16_s10, [#allocation3]  }
   0x4   :  { %94 = dma.done.wait [#allocation3], 256  }
   0x5   :  { %95 = vsyncadd [#allocation3], 4294967040  ;;  %s99_s11 = smov [#allocation5]   ;;  %s34_s15 = sshll.u32 %s117_s1, 4  ;;  %v23_v0 = vld [vmem:[#allocation2] sm:$0xff]  ;;  %v24_v1 = vld [vmem:[#allocation2 + $0x8] sm:$0xff]  ;;  %s35_s15 = int_to_ptr.hbm [resolvable:$true] %s34_s15 }
   0x6   :  { %s32_s12 = sshll.u32 %s99_s11, 4  ;;  %25 = vst [vmem:[#allocation5] sm:$0xff] %v23_v0  ;;  %s33_s12 = int_to_ptr.vmem [resolvable:$true] %s32_s12 }
   0x7   :  { %26 = vst [vmem:[#allocation5 + $0x8] sm:$0xff] %v24_v1 }
   0x8   :  { %37 = dma.vmem_to_hbm [thread:$0]  %s33_s12, 256, %s35_s15, [#allocation4]  }
   0x9   :  { %96 = dma.done.wait [#allocation4], 256  }
   0xa   :  { %97 = vsyncadd [#allocation4], 4294967040 }
   0xb   :  { %42 = vsyncpa [#allocation3], 1 }
   0xc   :  { %43 = vsyncpa [#allocation4], 1 }

</bundles_post_ra>
